<compile_context>
chip_gen: v7x
topology: tpu7x:2x2x1
jax: 0.10.0
libtpu: 0.0.40
codegen_flags: <defaults>
</compile_context>

<pallas_src>
import math
import functools

import jax
import jax.numpy as jnp
from jax.experimental import pallas as pl
from jax.experimental.pallas import tpu as pltpu


def _round_up(x: int, m: int) -> int:
    return ((x + m - 1) // m) * m


def _token_embedding_kernel(ids_ref, table_hbm, out_ref, gather_buf, dma_sem,
                            *, tokens_per_block, scale):
    """Gather `tokens_per_block` embedding rows for this grid step and write
    them scaled by sqrt(d_model).

    ids_ref    : SMEM scalar-prefetch ref, flat padded token ids [N_pad] int32
    table_hbm  : full embedding table [V, D], left in HBM (memory_space=ANY)
    out_ref    : (T, D) VMEM output block for this grid step
    gather_buf : (T, D) VMEM scratch the gathered rows are DMA'd into
    dma_sem    : shared DMA semaphore (all T row copies are the same size)
    """
    base = pl.program_id(0) * tokens_per_block
    sem = dma_sem.at[0]

    # Issue all T row gathers first (scalar SMEM reads happen before any
    # .wait(), avoiding the SMEM sst->sld forwarding stall), then wait.
    @pl.loop(0, tokens_per_block)
    def _issue(t):
        row = ids_ref[base + t]
        pltpu.make_async_copy(table_hbm.at[row], gather_buf.at[t], sem).start()

    @pl.loop(0, tokens_per_block)
    def _wait(t):
        pltpu.make_async_copy(table_hbm.at[0], gather_buf.at[t], sem).wait()

    # One dense (T, D) scaled store -> unmasked full-vreg stores, single
    # writeback DMA per block.
    out_ref[...] = (gather_buf[...] * scale).astype(out_ref.dtype)


def token_embedding(token_ids: jax.Array, emb_table: jax.Array,
                    *, tokens_per_block: int = 128) -> jax.Array:
    """Equivalent of TokenEmbedding.forward: emb_table[token_ids] * sqrt(D)."""
    B, S = token_ids.shape
    V, D = emb_table.shape
    N = B * S
    scale = math.sqrt(D)

    # Guard the data-dependent DMA against out-of-range ids (PyTorch raises;
    # here we clip so an invalid id can never drive an OOB HBM read).
    ids_flat = jnp.clip(token_ids.reshape(N).astype(jnp.int32), 0, V - 1)

    # T tokens per grid step: multiple of 8 for (8,128)-dense output tiles.
    T = min(tokens_per_block, _round_up(N, 8))
    T = _round_up(T, 8)
    N_pad = _round_up(N, T)
    if N_pad != N:
        ids_flat = jnp.pad(ids_flat, (0, N_pad - N))  # pad with id 0 (valid)

    out_flat = pl.pallas_call(
        functools.partial(_token_embedding_kernel,
                          tokens_per_block=T, scale=scale),
        out_shape=jax.ShapeDtypeStruct((N_pad, D), emb_table.dtype),
        grid_spec=pltpu.PrefetchScalarGridSpec(
            num_scalar_prefetch=1,
            grid=(N_pad // T,),
            in_specs=[
                # Embedding table stays in HBM; rows are gathered manually.
                pl.BlockSpec(memory_space=pl.ANY),
            ],
            out_specs=pl.BlockSpec((T, D), lambda i, ids: (i, 0)),
            scratch_shapes=[
                pltpu.VMEM((T, D), emb_table.dtype),
                pltpu.SemaphoreType.DMA((1,)),
            ],
        ),
        compiler_params=pltpu.CompilerParams(
            dimension_semantics=("parallel",)),
    )(ids_flat, emb_table)

    return out_flat[:N].reshape(B, S, D)


def init_embedding_table(key, vocab_size: int, d_model: int,
                         padding_idx=None, dtype=jnp.float32) -> jax.Array:
    """Deterministic stand-in for nn.Embedding's N(0,1) init (padding row zeroed)."""
    table = jax.random.normal(key, (vocab_size, d_model), dtype=dtype)
    if padding_idx is not None:
        table = table.at[padding_idx].set(0.0)
    return table


if __name__ == "__main__":
    key = jax.random.PRNGKey(0)
    k_ids, k_emb, k_ids2, k_emb2 = jax.random.split(key, 4)

    # Small shapes matching the module's forward: x is [batch, seq] token ids.
    vocab_size, d_model = 64, 128
    batch, seq = 2, 8
    padding_idx = 0

    token_ids = jax.random.randint(k_ids, (batch, seq), 0, vocab_size,
                                   dtype=jnp.int32)
    emb_table = init_embedding_table(k_emb, vocab_size, d_model,
                                     padding_idx=padding_idx)

    out = jax.block_until_ready(token_embedding(token_ids, emb_table))
    ref = jnp.take(emb_table, token_ids, axis=0) * math.sqrt(d_model)
    assert out.shape == (batch, seq, d_model)
    assert jnp.allclose(out, ref, atol=1e-5, rtol=1e-5)

    # Second check: multiple grid steps + N not a multiple of T (padding path).
    vocab2, d2 = 512, 256
    b2, s2 = 3, 50
    ids2 = jax.random.randint(k_ids2, (b2, s2), 0, vocab2, dtype=jnp.int32)
    tbl2 = init_embedding_table(k_emb2, vocab2, d2)
    out2 = jax.block_until_ready(
        token_embedding(ids2, tbl2, tokens_per_block=64))
    ref2 = jnp.take(tbl2, ids2, axis=0) * math.sqrt(d2)
    assert out2.shape == (b2, s2, d2)
    assert jnp.allclose(out2, ref2, atol=1e-5, rtol=1e-5)

    print("KERNEL_OK")
</pallas_src>

<mosaic_0001>
module attributes {stable_mosaic.version = 11 : i64} {
  func.func @_token_embedding_kernel(%arg0: i32, %arg1: memref<16xi32, #tpu.memory_space<smem>>, %arg2: memref<64x128xf32, #tpu.memory_space<any>>, %arg3: memref<16x128xf32, #tpu.memory_space<vmem>>, %arg4: memref<16x128xf32, #tpu.memory_space<vmem>>, %arg5: memref<1x!tpu.dma_semaphore, #tpu.memory_space<semaphore_mem>>) attributes {dimension_semantics = [#tpu.dimension_semantics<parallel>], iteration_bounds = array<i64: 1>, scalar_prefetch = 1 : i64, scratch_operands = 2 : i64, tpu.core_type = #tpu.core_type<tc>, window_params = [{}, {transform_indices = @transform_1, window_bounds = array<i64: 16, 128>}]} {
    %c16_i32 = arith.constant 16 : i32
    %0 = arith.muli %arg0, %c16_i32 : i32
    %c0_i32 = arith.constant 0 : i32
    %c0_i32_0 = arith.constant 0 : i32
    %c16_i32_1 = arith.constant 16 : i32
    %1 = arith.addi %c0_i32_0, %c16_i32_1 : i32
    %c1_i32 = arith.constant 1 : i32
    scf.for %arg6 = %c0_i32_0 to %1 step %c1_i32  : i32 {
      %c1_i32_11 = arith.constant 1 : i32
      %7 = arith.muli %arg6, %c1_i32_11 : i32
      %c0_i32_12 = arith.constant 0 : i32
      %8 = arith.addi %c0_i32_12, %7 : i32
      %9 = arith.addi %0, %8 : i32
      %10 = arith.index_cast %9 : i32 to index
      %11 = memref.load %arg1[%10] : memref<16xi32, #tpu.memory_space<smem>>
      %c0_i32_13 = arith.constant 0 : i32
      %12 = tpu.memref_slice %arg2[%11, %c0_i32_13] : memref<64x128xf32, #tpu.memory_space<any>> -> memref<1x128xf32, #tpu.memory_space<any>>
      %13 = tpu.memref_squeeze %12 : memref<1x128xf32, #tpu.memory_space<any>> -> memref<128xf32, #tpu.memory_space<any>>
      %c0_i32_14 = arith.constant 0 : i32
      %14 = tpu.memref_slice %arg4[%8, %c0_i32_14] : memref<16x128xf32, #tpu.memory_space<vmem>> -> memref<1x128xf32, #tpu.memory_space<vmem>>
      %15 = tpu.memref_squeeze %14 : memref<1x128xf32, #tpu.memory_space<vmem>> -> memref<128xf32, #tpu.memory_space<vmem>>
      %16 = tpu.memref_slice %arg5[%c0_i32] : memref<1x!tpu.dma_semaphore, #tpu.memory_space<semaphore_mem>> -> memref<1x!tpu.dma_semaphore, #tpu.memory_space<semaphore_mem>>
      %17 = tpu.memref_squeeze %16 : memref<1x!tpu.dma_semaphore, #tpu.memory_space<semaphore_mem>> -> memref<!tpu.dma_semaphore, #tpu.memory_space<semaphore_mem>>
      tpu.enqueue_dma source(%13 : memref<128xf32, #tpu.memory_space<any>>) target(%15 : memref<128xf32, #tpu.memory_space<vmem>>) target_semaphore(%17 : memref<!tpu.dma_semaphore, #tpu.memory_space<semaphore_mem>>)
    }
    %c16_i32_2 = arith.constant 16 : i32
    %c0_i32_3 = arith.constant 0 : i32
    %c0_i32_4 = arith.constant 0 : i32
    %c16_i32_5 = arith.constant 16 : i32
    %2 = arith.addi %c0_i32_4, %c16_i32_5 : i32
    %c1_i32_6 = arith.constant 1 : i32
    scf.for %arg6 = %c0_i32_4 to %2 step %c1_i32_6  : i32 {
      %c1_i32_11 = arith.constant 1 : i32
      %7 = arith.muli %arg6, %c1_i32_11 : i32
      %c0_i32_12 = arith.constant 0 : i32
      %8 = arith.addi %c0_i32_12, %7 : i32
      %c0_i32_13 = arith.constant 0 : i32
      %c0_i32_14 = arith.constant 0 : i32
      %9 = tpu.memref_slice %arg2[%c0_i32_13, %c0_i32_14] : memref<64x128xf32, #tpu.memory_space<any>> -> memref<1x128xf32, #tpu.memory_space<any>>
      %10 = tpu.memref_squeeze %9 : memref<1x128xf32, #tpu.memory_space<any>> -> memref<128xf32, #tpu.memory_space<any>>
      %c0_i32_15 = arith.constant 0 : i32
      %11 = tpu.memref_slice %arg4[%8, %c0_i32_15] : memref<16x128xf32, #tpu.memory_space<vmem>> -> memref<1x128xf32, #tpu.memory_space<vmem>>
      %12 = tpu.memref_squeeze %11 : memref<1x128xf32, #tpu.memory_space<vmem>> -> memref<128xf32, #tpu.memory_space<vmem>>
      %13 = tpu.memref_slice %arg5[%c0_i32_3] : memref<1x!tpu.dma_semaphore, #tpu.memory_space<semaphore_mem>> -> memref<1x!tpu.dma_semaphore, #tpu.memory_space<semaphore_mem>>
      %14 = tpu.memref_squeeze %13 : memref<1x!tpu.dma_semaphore, #tpu.memory_space<semaphore_mem>> -> memref<!tpu.dma_semaphore, #tpu.memory_space<semaphore_mem>>
      tpu.wait_dma2 semaphore(%14 : memref<!tpu.dma_semaphore, #tpu.memory_space<semaphore_mem>>) src(%10 : memref<128xf32, #tpu.memory_space<any>>) dst(%12 : memref<128xf32, #tpu.memory_space<vmem>>)
    }
    %c16_i32_7 = arith.constant 16 : i32
    %c0 = arith.constant 0 : index
    %c0_8 = arith.constant 0 : index
    %3 = vector.load %arg4[%c0, %c0_8] : memref<16x128xf32, #tpu.memory_space<vmem>>, vector<16x128xf32>
    %cst = arith.constant 11.3137083 : f32
    %4 = vector.broadcast %cst : f32 to vector<16x128xf32>
    %5 = arith.mulf %3, %4 : vector<16x128xf32>
    %c0_9 = arith.constant 0 : index
    %c0_10 = arith.constant 0 : index
    %6 = vector.load %arg3[%c0_9, %c0_10] : memref<16x128xf32, #tpu.memory_space<vmem>>, vector<16x128xf32>
    tpu.vector_store %arg3[%c0_9, %c0_10], %5 {strides = array<i32>} : memref<16x128xf32, #tpu.memory_space<vmem>>, vector<16x128xf32>,
    return
  }
  func.func @transform_1(%arg0: i32, %arg1: memref<16xi32, #tpu.memory_space<smem>>) -> (i32, i32) {
    %c0_i32 = arith.constant 0 : i32
    %c0_i32_0 = arith.constant 0 : i32
    return %arg0, %c0_i32 : i32, i32
  }
}

</mosaic_0001>

<bundles_post_ra>
// kernel: tpu_custom_call.1
= control target key start
LH: loop header
LB: loop body
LE: loop exit
PB: predicated region body
PF: predicated region fallthrough
CT: control target
= control target key end

     0   :  { %s247_s0 = inlined_call_operand.hbm [shape: s32[16], index: 0, kind: input, shape index: {}]   ;;  %s248_s1 = inlined_call_operand.hbm [shape: f32[64,128], index: 1, kind: input, shape index: {}]   ;;  %s249_s2 = inlined_call_operand.hbm [shape: f32[16,128], index: 2, kind: output, shape index: {}]  }
   0x1   :  { %s106_s11 = scalar_lea.hbm %s247_s0, 16 }
   0x2   :  { %p107_p0 = scmp.ne.s32.totalorder %s247_s0, %s106_s11  ;;  %p110_p1 = scmp.lt.u32.totalorder %s106_s11, %s247_s0 }
   0x4   :  { %p112_p2 = pnand %p110_p1, %p107_p0 }
   0x6   :  { %115 = shalt.err (!%p112_p2)  }
   0x7   :  { %s184_s16 = smov [#allocation5]  }
   0x8   :  { %8 = dma.hbm_to_smem %s247_s0, 16, %s184_s16, [#allocation4] }
   0x9   :  { %170 = dma.done.wait [#allocation4], 16 }
   0xa   :  { %171 = vsyncadd [#allocation4], 4294967280 }
   0xb   :  { %10 = sfence }
   0xc   :  { %11 = vsyncpa [#allocation7], 0  ;;  %s216_s19 = smov 0  }
   0xd LB: > { %s20_s20 = sld [smem:[#allocation5 + %s178_s19]]  ;;  %s23_s21 = scalar_lea.vmem [#allocation2], %s178_s19  ;;  %s178_s19 = sphi %s216_s19, %s18_s19  }
   0xe   : > { %s31_s22 = sshll.u32 %s23_s21, 4  ;;  %s118_s29 = scalar_lea.hbm %s248_s1, 1024  ;;  %s32_s22 = int_to_ptr.vmem [resolvable:$true] %s31_s22 }
  0x13   : > { %s84_s23 = sshll.u32 %s20_s20, 4 }
  0x14   : > { %s22_s25 = scalar_lea.hbm %s248_s1, %s84_s23 }
  0x15   : > { %s116_s26 = scalar_lea.hbm %s22_s25, 16  ;;  %p119_p4 = scmp.lt.u32.totalorder %s22_s25, %s248_s1 }
  0x16   : > { %p117_p3 = scmp.ne.s32.totalorder %s22_s25, %s116_s26  ;;  %p120_p5 = scmp.lt.u32.totalorder %s118_s29, %s116_s26 }
  0x17   : > { %p122_p7 = scmp.lt.u32.totalorder %s116_s26, %s22_s25 }
  0x18   : > { %p121_p6 = por %p120_p5, %p119_p4 }
  0x1a   : > { %p123_p8 = por %p122_p7, %p121_p6 }
  0x1c   : > { %p124_p9 = pnand %p123_p8, %p117_p3 }
  0x1e   : > { %127 = shalt.err (!%p124_p9)  }
  0x1f   : > { %s128_s4 = scalar_lea.vmem %s32_s22, 16  ;;  %s185_s5 = smov [#allocation2]  }
  0x20   : > { %p129_p10 = scmp.ne.s32.totalorder %s32_s22, %s128_s4  ;;  %s130_s6 = sshll.u32 %s185_s5, 4  ;;  %s131_s6 = int_to_ptr.vmem [resolvable:$false] %s130_s6 }
  0x21   : > { %s132_s7 = scalar_lea.vmem %s131_s6, 256  ;;  %p133_p11 = scmp.lt.s32.totalorder %s32_s22, %s131_s6 }
  0x22   : > { %p134_p12 = scmp.lt.s32.totalorder %s132_s7, %s128_s4 }
  0x24   : > { %p135_p13 = por %p134_p12, %p133_p11 }
  0x26   : > { %p136_p0 = pnand %p135_p13, %p129_p10 }
  0x28   : > { %139 = shalt.err (!%p136_p0)  }
  0x29   : > { %34 = dma.hbm_to_vmem [thread:$0]  %s22_s25, 16, %s32_s22, [#allocation3] }
  0x2a   : > { %s18_s19 = sadd.s32 1, %s178_s19  }
  0x2b   : > { %p15_p1 = scmp.ge.s32.totalorder %s18_s19, 16  }
  0x2c   :  { %s180_s8 = smov (%p15_p1), 0  }
  0x2d   :  { %17 = sbr.rel (!%p15_p1) target bundleno = 13 (0xd), region = 40 }
  0x34 LB: > { %172 = dma.done.wait [#allocation3], 16  ;;  %s182_s8 = sphi %s180_s8, %s40_s8  }
  0x35   : > { %173 = vsyncadd [#allocation3], 4294967280  ;;  %s40_s8 = sadd.s32 1, %s182_s8  }
  0x36   : > { %p37_p2 = scmp.ge.s32.totalorder %s40_s8, 16  }
  0x37   :  { %v43_v0 = vld [vmem:[#allocation2] sm:$0xff] (%p37_p2)  ;;  %v44_v1 = vld [vmem:[#allocation2 + $0x8] sm:$0xff] (%p37_p2)  ;;  %s186_s9 = smov (%p37_p2), [#allocation6]  }
  0x38   :  { %39 = sbr.rel (!%p37_p2) target bundleno = 52 (0x34), region = 51  ;;  %v45_v2 = vmul.f32 (%p37_p2), 11.313708, %v43_v0  ;;  %v46_v3 = vmul.f32 (%p37_p2), 11.313708, %v44_v1  ;;  %s54_s10 = sshll.u32 (%p37_p2), %s186_s9, 4  ;;  %s55_s10 = int_to_ptr.vmem [resolvable:$true] %s54_s10 }
  0x39   :  { %s140_s11 = scalar_lea.vmem (%p37_p2), %s55_s10, 256  ;;  %p145_p4 = scmp.lt.s32.totalorder (%p37_p2), %s55_s10, %s55_s10 }
  0x3a   :  { %47 = vst [vmem:[#allocation6] sm:$0xff] (%p37_p2), %v45_v2  ;;  %48 = vst [vmem:[#allocation6 + $0x8] sm:$0xff] (%p37_p2), %v46_v3  ;;  %p141_p3 = scmp.ne.s32.totalorder (%p37_p2), %s55_s10, %s140_s11  ;;  %p146_p5 = scmp.lt.s32.totalorder (%p37_p2), %s140_s11, %s140_s11 }
  0x3c   :  { %p147_p6 = por (%p37_p2), %p146_p5, %p145_p4 }
  0x3e   :  { %p148_p7 = pnand (%p37_p2), %p147_p6, %p141_p3 }
  0x40   :  { %151 = shalt.err (!%p148_p7)
}
  0x41   :  { %s152_s13 = scalar_lea.hbm %s249_s2, 256 }
  0x42   :  { %p153_p8 = scmp.ne.s32.totalorder %s249_s2, %s152_s13  ;;  %p156_p9 = scmp.lt.u32.totalorder %s152_s13, %s249_s2 }
  0x44   :  { %p158_p10 = pnand %p156_p9, %p153_p8 }
  0x46   :  { %161 = shalt.err (!%p158_p10)
}
  0x47   :  { %s187_s18 = smov 128   ;;  %s188_s19 = smov 8  }
  0x48   :  { %60 = dma.vmem_to_hbm [thread:$0]  %s55_s10, 256, %s249_s2, [#allocation7], %s187_s18, %s187_s18, %s188_s19  }
  0x49   :  { %174 = dma.done.wait [#allocation7], 256  }
  0x4a   :  { %175 = vsyncadd [#allocation7], 4294967040 }
  0x4b   :  { %64 = vsyncpa [#allocation7], 1 }
  0x4c   :  { %65 = vsyncmov [#allocation3] }
  0x4f   :  { %s66_s22 = vpop.sfrf %65 }
  0x50   :  { %p85_p11 = scmp.ne.s32.totalorder %s66_s22, 0 }
  0x52   :  { %70 = shalt.err (%p85_p11)  }

</bundles_post_ra>
